<compile_context>
chip_gen: v6e
topology: v6e:2x2x1
jax: 0.10.0
libtpu: 0.0.40
codegen_flags: <defaults>
</compile_context>

<pallas_src>
import jax
import jax.numpy as jnp
from jax import lax
from jax.experimental import pallas as pl
from jax.experimental.pallas import tpu as pltpu

BLOCK_SIZE = 32      # max sequence length (tril buffer size)
NUM_EMBEDDING = 64   # C
HEAD_SIZE = 16       # H


def head_kernel(x_ref, w_ref, o_ref):
    # x_ref: (B*T, C)   w_ref: (C, 3H) packed as [Wk | Wq | Wv]   o_ref: (B, T, H)
    B, T, H = o_ref.shape
    C = x_ref.shape[-1]

    x = x_ref[...]                     # (B*T, C) f32
    w = w_ref[...]                     # (C, 3H)  f32

    # One fused projection matmul (M = B*T, N = 3H), then slice k/q/v.
    qkv = jnp.dot(x, w, preferred_element_type=jnp.float32)       # (B*T, 3H)
    qkv = qkv.reshape(B, T, 3 * H)

    k = qkv[:, :, 0:H]                                            # (B, T, H)
    q = qkv[:, :, H:2 * H] * (C ** -0.5)   # scale on q, matches * C**-0.5 on s
    v = qkv[:, :, 2 * H:3 * H]

    # Batched q @ k^T, contracting the last dim of both (no explicit k.T).
    s = lax.dot_general(q, k, (((2,), (2,)), ((0,), (0,))),
                        preferred_element_type=jnp.float32)       # (B, T, T)

    # Causal mask (tril): col > row -> -inf. Diagonal always kept, so every
    # softmax row has at least one finite entry (no NaN).
    row = lax.broadcasted_iota(jnp.int32, (B, T, T), 1)
    col = lax.broadcasted_iota(jnp.int32, (B, T, T), 2)
    s = jnp.where(col <= row, s, -jnp.inf)

    # Softmax along last axis; reciprocal goes to the EUP slot.
    s = s - jnp.max(s, axis=-1, keepdims=True)
    p = jnp.exp(s)
    p = p * pl.reciprocal(jnp.sum(p, axis=-1, keepdims=True), approx=True)

    # dropout(p=0.0) is identity -> omitted.

    out = lax.dot_general(p, v, (((2,), (1,)), ((0,), (0,))),
                          preferred_element_type=jnp.float32)     # (B, T, H)
    o_ref[...] = out.astype(o_ref.dtype)


def head_forward(x, wk, wq, wv):
    """x: (B, T, C); wk/wq/wv: (C, H) (pre-transposed Linear weights). Returns (B, T, H)."""
    B, T, C = x.shape
    H = wk.shape[1]
    w_qkv = jnp.concatenate([wk, wq, wv], axis=1)   # (C, 3H)
    x2d = x.reshape(B * T, C)                       # fold batch into the matmul M dim
    return pl.pallas_call(
        head_kernel,
        out_shape=jax.ShapeDtypeStruct((B, T, H), x.dtype),
        grid=(1,),                                  # single step: whole problem at once
        in_specs=[
            pl.BlockSpec((B * T, C), lambda i: (0, 0)),
            pl.BlockSpec((C, 3 * H), lambda i: (0, 0)),
        ],
        out_specs=pl.BlockSpec((B, T, H), lambda i: (0, 0, 0)),
        compiler_params=pltpu.CompilerParams(
            dimension_semantics=("arbitrary",)),
    )(x2d, w_qkv)


def reference_forward(x, wk, wq, wv):
    """Pure-JAX reference mirroring the PyTorch module."""
    B, T, C = x.shape
    k = x @ wk
    q = x @ wq
    v = x @ wv
    w = (q @ jnp.swapaxes(k, -2, -1)) * C ** (-0.5)
    tril = jnp.tril(jnp.ones((T, T), dtype=bool))
    w = jnp.where(tril, w, -jnp.inf)
    w = jax.nn.softmax(w, axis=-1)
    return w @ v


if __name__ == "__main__":
    B, T, C, H = 2, BLOCK_SIZE, NUM_EMBEDDING, HEAD_SIZE

    key = jax.random.PRNGKey(0)
    kx, kk, kq, kv = jax.random.split(key, 4)

    x = jax.random.normal(kx, (B, T, C), dtype=jnp.float32)

    # nn.Linear(C, H, bias=False) default init: U(-1/sqrt(C), 1/sqrt(C)),
    # stored here already transposed to (C, H).
    bound = 1.0 / (C ** 0.5)
    wk = jax.random.uniform(kk, (C, H), jnp.float32, -bound, bound)
    wq = jax.random.uniform(kq, (C, H), jnp.float32, -bound, bound)
    wv = jax.random.uniform(kv, (C, H), jnp.float32, -bound, bound)

    out = head_forward(x, wk, wq, wv)
    jax.block_until_ready(out)

    ref = reference_forward(x, wk, wq, wv)
    assert out.shape == (B, T, H)
    # Tolerance accounts for the approximate EUP reciprocal in the softmax.
    assert jnp.allclose(out, ref, atol=2e-3, rtol=2e-3), float(
        jnp.max(jnp.abs(out - ref)))

    print("KERNEL_OK")
</pallas_src>

<mosaic_0001>
module attributes {stable_mosaic.version = 11 : i64} {
  func.func @head_kernel(%arg0: i32, %arg1: memref<64x64xf32, #tpu.memory_space<vmem>>, %arg2: memref<64x48xf32, #tpu.memory_space<vmem>>, %arg3: memref<2x32x16xf32, #tpu.memory_space<vmem>>) attributes {dimension_semantics = [#tpu.dimension_semantics<arbitrary>], iteration_bounds = array<i64: 1>, scalar_prefetch = 0 : i64, scratch_operands = 0 : i64, tpu.core_type = #tpu.core_type<tc>, window_params = [{pipeline_mode = #tpu.pipeline_mode<synchronous>, transform_indices = @transform_0, window_bounds = array<i64: 64, 64>}, {pipeline_mode = #tpu.pipeline_mode<synchronous>, transform_indices = @transform_1, window_bounds = array<i64: 64, 48>}, {pipeline_mode = #tpu.pipeline_mode<synchronous>, transform_indices = @transform_2, window_bounds = array<i64: 2, 32, 16>}]} {
    %c0 = arith.constant 0 : index
    %c0_0 = arith.constant 0 : index
    %0 = vector.load %arg1[%c0, %c0_0] : memref<64x64xf32, #tpu.memory_space<vmem>>, vector<64x64xf32>
    %c0_1 = arith.constant 0 : index
    %c0_2 = arith.constant 0 : index
    %1 = vector.load %arg2[%c0_1, %c0_2] : memref<64x48xf32, #tpu.memory_space<vmem>>, vector<64x48xf32>
    %cst = arith.constant dense<0.000000e+00> : vector<64x48xf32>
    %2 = tpu.matmul %0, %1, %cst {dimension_numbers = #tpu.dot_dimension_numbers<[1], [0], [0], [1], [0, 0, 1, 1], [], []>} : vector<64x64xf32>, vector<64x48xf32>, vector<64x48xf32> -> vector<64x48xf32>
    %3 = vector.shape_cast %2 : vector<64x48xf32> to vector<2x32x48xf32>
    %4 = vector.extract_strided_slice %3 {offsets = [0, 0, 0], sizes = [2, 32, 16], strides = [1, 1, 1]} : vector<2x32x48xf32> to vector<2x32x16xf32>
    %5 = vector.extract_strided_slice %3 {offsets = [0, 0, 16], sizes = [2, 32, 16], strides = [1, 1, 1]} : vector<2x32x48xf32> to vector<2x32x16xf32>
    %cst_3 = arith.constant 1.250000e-01 : f32
    %6 = vector.broadcast %cst_3 : f32 to vector<2x32x16xf32>
    %7 = arith.mulf %5, %6 : vector<2x32x16xf32>
    %8 = vector.extract_strided_slice %3 {offsets = [0, 0, 32], sizes = [2, 32, 16], strides = [1, 1, 1]} : vector<2x32x48xf32> to vector<2x32x16xf32>
    %cst_4 = arith.constant dense<0.000000e+00> : vector<2x32x32xf32>
    %9 = tpu.matmul %7, %4, %cst_4 {dimension_numbers = #tpu.dot_dimension_numbers<[2], [2], [1], [1], [0, 0, 0, 1, 1, 1], [0], [0]>} : vector<2x32x16xf32>, vector<2x32x16xf32>, vector<2x32x32xf32> -> vector<2x32x32xf32>
    %10 = tpu.iota {dimensions = array<i32: 1>} : vector<2x32x32xi32>
    %11 = tpu.iota {dimensions = array<i32: 2>} : vector<2x32x32xi32>
    %12 = arith.cmpi sle, %11, %10 : vector<2x32x32xi32>
    %cst_5 = arith.constant 0xFF800000 : f32
    %13 = vector.broadcast %cst_5 : f32 to vector<2x32x32xf32>
    %14 = arith.select %12, %9, %13 : vector<2x32x32xi1>, vector<2x32x32xf32>
    %cst_6 = arith.constant dense<0xFF800000> : vector<2x32xf32>
    %15 = vector.multi_reduction <maximumf>, %14, %cst_6 [2] : vector<2x32x32xf32> to vector<2x32xf32>
    %16 = vector.shape_cast %15 : vector<2x32xf32> to vector<2x32x1xf32>
    %17 = vector.broadcast %16 : vector<2x32x1xf32> to vector<2x32x32xf32>
    %18 = arith.subf %14, %17 : vector<2x32x32xf32>
    %19 = math.exp %18 : vector<2x32x32xf32>
    %cst_7 = arith.constant dense<0.000000e+00> : vector<2x32xf32>
    %20 = vector.multi_reduction <add>, %19, %cst_7 [2] : vector<2x32x32xf32> to vector<2x32xf32>
    %21 = vector.shape_cast %20 : vector<2x32xf32> to vector<2x32x1xf32>
    %22 = tpu.reciprocal %21 {approx = true} : vector<2x32x1xf32> -> vector<2x32x1xf32>
    %23 = vector.broadcast %22 : vector<2x32x1xf32> to vector<2x32x32xf32>
    %24 = arith.mulf %19, %23 : vector<2x32x32xf32>
    %cst_8 = arith.constant dense<0.000000e+00> : vector<2x32x16xf32>
    %25 = tpu.matmul %24, %8, %cst_8 {dimension_numbers = #tpu.dot_dimension_numbers<[2], [1], [1], [2], [0, 0, 0, 1, 1, 2], [0], [0]>} : vector<2x32x32xf32>, vector<2x32x16xf32>, vector<2x32x16xf32> -> vector<2x32x16xf32>
    %c0_9 = arith.constant 0 : index
    %c0_10 = arith.constant 0 : index
    %c0_11 = arith.constant 0 : index
    %26 = vector.load %arg3[%c0_9, %c0_10, %c0_11] : memref<2x32x16xf32, #tpu.memory_space<vmem>>, vector<2x32x16xf32>
    tpu.vector_store %arg3[%c0_9, %c0_10, %c0_11], %25 {strides = array<i32>} : memref<2x32x16xf32, #tpu.memory_space<vmem>>, vector<2x32x16xf32>,
    return
  }
  func.func @transform_0(%arg0: i32) -> (i32, i32) {
    %c0_i32 = arith.constant 0 : i32
    %c0_i32_0 = arith.constant 0 : i32
    %c0_i32_1 = arith.constant 0 : i32
    return %c0_i32, %c0_i32_0 : i32, i32
  }
  func.func @transform_1(%arg0: i32) -> (i32, i32) {
    %c0_i32 = arith.constant 0 : i32
    %c0_i32_0 = arith.constant 0 : i32
    %c0_i32_1 = arith.constant 0 : i32
    return %c0_i32, %c0_i32_0 : i32, i32
  }
  func.func @transform_2(%arg0: i32) -> (i32, i32, i32) {
    %c0_i32 = arith.constant 0 : i32
    %c0_i32_0 = arith.constant 0 : i32
    %c0_i32_1 = arith.constant 0 : i32
    %c0_i32_2 = arith.constant 0 : i32
    return %c0_i32, %c0_i32_0, %c0_i32_1 : i32, i32, i32
  }
}

</mosaic_0001>

<bundles_post_ra>
// kernel: tpu_custom_call.1
= control target key start
LH: loop header
LB: loop body
LE: loop exit
PB: predicated region body
PF: predicated region fallthrough
CT: control target
= control target key end

     0   :  { %vm27_vm0 = vcmask 523264   ;;  %vm177_vm1 = vcmask 130048   ;;  %s936_s12 = smov 112   ;;  %v400_v40 = vlaneseq  ;;  %vm419_vm3 = vcmask 261120   ;;  %s1165_s1 = inlined_call_operand.vmem [shape: f32[64,48], index: 1, kind: input, shape index: {}]   ;;  %s1166_s0 = inlined_call_operand.vmem [shape: f32[64,64], index: 0, kind: input, shape index: {}]   ;;  %s1167_s2 = inlined_call_operand.vmem [shape: f32[2,32,16], index: 2, kind: output, shape index: {}]  }
   0x1   :  { %v26_v0 = vld [vmem:[%s1165_s1 + $0x38] sm:$0xff]  ;;  %v25_v1 = vld [vmem:[%s1165_s1 + $0x30] sm:$0xff]  ;;  %v24_v2 = vld [vmem:[%s1165_s1 + $0x28] sm:$0xff] }
   0x2   :  { %818 = vmatprep.subr.mxu0 %v26_v0  ;;  %v11_v3 = vld [vmem:[%s1166_s0] sm:$0xff]  ;;  %v22_v5 = vld [vmem:[%s1165_s1 + $0x18] sm:$0xff]  ;;  %v21_v6 = vld [vmem:[%s1165_s1 + $0x10] sm:$0xff]  ;;  %v401_v41 = vshrl.u32 %v400_v40, 7  ;;  %v406_v43 = vand.u32 127, %v400_v40 }
   0x3   :  { %819 = vmatpush3.msra.mxu0 %v26_v0  ;;  %834 = vmatprep.mubr.msk.f32.mxu0 %vm27_vm0, %v11_v3  ;;  %v23_v4 = vld [vmem:[%s1165_s1 + $0x20] sm:$0xff]  ;;  %v20_v7 = vld [vmem:[%s1165_s1 + $0x8] sm:$0xff]  ;;  %v13_v10 = vld [vmem:[%s1166_s0 + $0x10] sm:$0xff] }
   0x4   :  { %820 = vmatprep.subr.mxu0 %v25_v1  ;;  %v19_v8 = vld [vmem:[%s1165_s1] sm:$0xff]  ;;  %v12_v9 = vld [vmem:[%s1166_s0 + $0x8] sm:$0xff]  ;;  %v14_v11 = vld [vmem:[%s1166_s0 + $0x18] sm:$0xff]  ;;  %v402_v42 = vadd.s32 8, %v401_v41  ;;  %vm407_vm4 = vcmp.le.s32.totalorder %v406_v43, %v401_v41  ;;  %v403_v45 = vadd.s32 16, %v401_v41  ;;  %v404_v49 = vadd.s32 24, %v401_v41 }
   0x5   :  { %821 = vmatpush3.msra.mxu0 %v25_v1  ;;  %v15_v12 = vld [vmem:[%s1166_s0 + $0x20] sm:$0xff]  ;;  %v16_v13 = vld [vmem:[%s1166_s0 + $0x28] sm:$0xff]  ;;  %v17_v14 = vld [vmem:[%s1166_s0 + $0x30] sm:$0xff] }
   0x6   :  { %822 = vmatprep.subr.mxu0 %v24_v2  ;;  %v18_v15 = vld [vmem:[%s1166_s0 + $0x38] sm:$0xff]  ;;  %vm408_vm2 = vcmp.le.s32.totalorder %v406_v43, %v402_v42  ;;  %vm409_vm5 = vcmp.le.s32.totalorder %v406_v43, %v403_v45  ;;  %vm410_vm6 = vcmp.le.s32.totalorder %v406_v43, %v404_v49  ;;  %s937_s0 = smov 96  }
   0x7   :  { %823 = vmatpush3.msra.mxu0 %v24_v2 }
   0x8   :  { %824 = vmatprep.subr.mxu0 %v23_v4 }
   0x9   :  { %825 = vmatpush3.msra.mxu0 %v23_v4 }
   0xa   :  { %826 = vmatprep.subr.mxu0 %v22_v5 }
   0xb   :  { %827 = vmatpush3.msra.mxu0 %v22_v5 }
   0xc   :  { %828 = vmatprep.subr.mxu0 %v21_v6 }
   0xd   :  { %829 = vmatpush3.msra.mxu0 %v21_v6 }
   0xe   :  { %830 = vmatprep.subr.mxu0 %v20_v7 }
   0xf   :  { %831 = vmatpush3.msra.mxu0 %v20_v7 }
  0x10   :  { %832 = vmatprep.subr.mxu0 %v19_v8 }
  0x11   :  { %833 = vmatpush3.msra.mxu0 %v19_v8 }
  0x12   :  { %835 = vmatmul.mubr.msk.f32.vlgmr.msra.gmra.mxu0 %vm27_vm0, %v12_v9 }
  0x13   :  { %837 = vmatprep.mubr.msk.f32.mxu0 %vm27_vm0, %v13_v10 }
  0x16   :  { %838 = vmatmul.mubr.msk.f32.gmra.mxu0 %vm27_vm0, %v14_v11 }
  0x17   :  { %840 = vmatprep.mubr.msk.f32.mxu0 %vm27_vm0, %v15_v12 }
  0x1a   :  { %841 = vmatmul.mubr.msk.f32.gmra.mxu0 %vm27_vm0, %v16_v13 }
  0x1b   :  { %843 = vmatprep.mubr.msk.f32.mxu0 %vm27_vm0, %v17_v14 }
  0x1e   :  { %844 = vmatmul.mubr.msk.f32.gmra.mxu0 %vm27_vm0, %v18_v15 }
  0xd2   :  { %v1009_v16 = vpop.f32.mrf.mxu0 }
  0xd3   :  { %v158_v21 = vmul.f32 0.125, %v1009_v16 }
  0xd4   :  { %v1011_v17 = vpop.f32.mrf.mxu0 }
  0xd5   :  { %v157_v18 = vmul.f32 0.125, %v1011_v17 }
  0xd6   :  { %v1014_v19 = vpop.f32.mrf.mxu0 }
  0xd7   :  { %169 = vrot.lane.b32.xlu0 %v157_v18, %s936_s12  ;;  %846 = vmatprep.subr.msk.mxu1 %vm177_vm1, %v1014_v19  ;;  %v160_v25 = vmul.f32 0.125, %v1014_v19 }
  0xd8   :  { %v1019_v20 = vpop.f32.mrf.mxu0  ;;  %847 = vmatpush3.xpose.msk.msra.mxu1 %vm177_vm1, %v1014_v19 }
  0xd9   :  { %848 = vmatprep.subr.msk.mxu1 %vm177_vm1, %v1019_v20  ;;  %v159_v22 = vmul.f32 0.125, %v1019_v20 }
  0xda   :  { %v1027_v23 = vpop.f32.mrf.mxu0 }
  0xdb   :  { %171 = vrot.lane.b32.xlu0 %v158_v21, %s936_s12  ;;  %173 = vrot.lane.b32.xlu1 %v159_v22, %s936_s12  ;;  %v162_v28 = vmul.f32 0.125, %v1027_v23 }
  0xdc   :  { %v1031_v24 = vpop.f32.mrf.mxu0  ;;  %849 = vmatpush3.xpose.msk.msra.mxu1 %vm177_vm1, %v1019_v20 }
  0xdd   :  { %850 = vmatprep.subr.msk.mxu1 %vm177_vm1, %v1009_v16  ;;  %v161_v26 = vmul.f32 0.125, %v1031_v24 }
  0xde   :  { %v1039_v27 = vpop.f32.mrf.mxu0 }
  0xdf   :  { %175 = vrot.lane.b32.xlu1 %v160_v25, %s936_s12  ;;  %860 = vmatprep.subr.msk.mxu0 %vm177_vm1, %v1039_v27  ;;  %v164_v31 = vmul.f32 0.125, %v1039_v27 }
  0xe0   :  { %851 = vmatpush3.xpose.msk.msra.mxu1 %vm177_vm1, %v1009_v16  ;;  %861 = vmatpush3.xpose.msk.msra.mxu0 %vm177_vm1, %v1039_v27  ;;  %v1049_v29 = vpop.f32.mrf.mxu0 }
  0xe1   :  { %852 = vmatprep.subr.msk.mxu1 %vm177_vm1, %v1011_v17  ;;  %287 = vrot.lane.b32.xlu0 %v161_v26, %s936_s12  ;;  %v163_v30 = vmul.f32 0.125, %v1049_v29 }
  0xe2   :  { %862 = vmatprep.subr.msk.mxu0 %vm177_vm1, %v1049_v29 }
  0xe3   :  { %289 = vrot.lane.b32.xlu1 %v162_v28, %s936_s12 }
  0xe4   :  { %853 = vmatpush3.xpose.msk.msra.mxu1 %vm177_vm1, %v1011_v17  ;;  %863 = vmatpush3.xpose.msk.msra.mxu0 %vm177_vm1, %v1049_v29 }
  0xe5   :  { %864 = vmatprep.subr.msk.mxu0 %vm177_vm1, %v1027_v23  ;;  %291 = vrot.lane.b32.xlu0 %v163_v30, %s936_s12 }
  0xe7   :  { %293 = vrot.lane.b32.xlu1 %v164_v31, %s936_s12 }
  0xe8   :  { %865 = vmatpush3.xpose.msk.msra.mxu0 %vm177_vm1, %v1027_v23 }
  0xe9   :  { %866 = vmatprep.subr.msk.mxu0 %vm177_vm1, %v1031_v24 }
  0xec   :  { %867 = vmatpush3.xpose.msk.msra.mxu0 %vm177_vm1, %v1031_v24 }
 0x149   :  { %v170_v32 = vpop.permute.xlu0 %169 }
 0x14a   :  { %854 = vmatprep.mubr.msk.f32.mxu1 %vm177_vm1, %v170_v32 }
 0x14d   :  { %v172_v33 = vpop.permute.xlu0 %171  ;;  %v174_v34 = vpop.permute.xlu1 %173 }
 0x14e   :  { %855 = vmatmul.mubr.msk.f32.vlgmr.msra.gmra.mxu1 %vm177_vm1, %v172_v33 }
 0x14f   :  { %857 = vmatprep.mubr.msk.f32.mxu1 %vm177_vm1, %v174_v34 }
 0x151   :  { %v176_v35 = vpop.permute.xlu1 %175 }
 0x152   :  { %858 = vmatmul.mubr.msk.f32.gmra.mxu1 %vm177_vm1, %v176_v35 }
 0x153   :  { %v288_v36 = vpop.permute.xlu0 %287 }
 0x154   :  { %868 = vmatprep.mubr.msk.f32.mxu0 %vm177_vm1, %v288_v36 }
 0x155   :  { %v290_v37 = vpop.permute.xlu1 %289 }
 0x156   :  { %869 = vmatmul.mubr.msk.f32.vlgmr.msra.gmra.mxu0 %vm177_vm1, %v290_v37 }
 0x157   :  { %v292_v38 = vpop.permute.xlu0 %291 }
 0x158   :  { %871 = vmatprep.mubr.msk.f32.mxu0 %vm177_vm1, %v292_v38 }
 0x159   :  { %v294_v39 = vpop.permute.xlu1 %293 }
 0x15a   :  { %872 = vmatmul.mubr.msk.f32.gmra.mxu0 %vm177_vm1, %v294_v39 }
 0x20e   :  { %v856_v44 = vpop.f32.mrf.mxu1 }
 0x20f   :  { %v412_v46 = vsel %vm408_vm2, %v856_v44, -inf }
 0x210   :  { %v264_v47 = vpop.f32.mrf.mxu1  ;;  %v423_v48 = vsel %vm419_vm3, %v412_v46, -inf }
 0x211   :  { %v411_v50 = vsel %vm407_vm4, %v264_v47, -inf  ;;  %424 = vmax.xlane.f32.xlu1 %v423_v48 }
 0x212   :  { %v859_v51 = vpop.f32.mrf.mxu1  ;;  %v420_v52 = vsel %vm419_vm3, %v411_v50, -inf }
 0x213   :  { %421 = vmax.xlane.f32.xlu0 %v420_v52  ;;  %v414_v57 = vsel %vm410_vm6, %v859_v51, -inf }
 0x214   :  { %v274_v53 = vpop.f32.mrf.mxu1  ;;  %v429_v62 = vsel %vm419_vm3, %v414_v57, -inf }
 0x215   :  { %v413_v54 = vsel %vm409_vm5, %v274_v53, -inf }
 0x216   :  { %v870_v55 = vpop.f32.mrf.mxu0  ;;  %v426_v56 = vsel %vm419_vm3, %v413_v54, -inf }
 0x217   :  { %427 = vmax.xlane.f32.xlu0 %v426_v56  ;;  %v416_v63 = vsel %vm408_vm2, %v870_v55, -inf }
 0x218   :  { %v381_v58 = vpop.f32.mrf.mxu0  ;;  %v435_v2 = vsel %vm419_vm3, %v416_v63, -inf }
 0x219   :  { %v415_v59 = vsel %vm407_vm4, %v381_v58, -inf }
 0x21a   :  { %v873_v60 = vpop.f32.mrf.mxu0  ;;  %v432_v61 = vsel %vm419_vm3, %v415_v59, -inf }
 0x21b   :  { %433 = vmax.xlane.f32.xlu1 %v432_v61  ;;  %430 = vmax.xlane.f32.xlu0 %v429_v62  ;;  %v418_v4 = vsel %vm410_vm6, %v873_v60, -inf }
 0x21c   :  { %v391_v0 = vpop.f32.mrf.mxu0  ;;  %v441_v5 = vsel %vm419_vm3, %v418_v4, -inf }
 0x21d   :  { %v417_v1 = vsel %vm409_vm5, %v391_v0, -inf }
 0x21e   :  { %v438_v3 = vsel %vm419_vm3, %v417_v1, -inf }
 0x21f   :  { %436 = vmax.xlane.f32.xlu0 %v435_v2  ;;  %439 = vmax.xlane.f32.xlu1 %v438_v3 }
 0x223   :  { %442 = vmax.xlane.f32.xlu0 %v441_v5 }
 0x230   :  { %514 = vrot.lane.b32.xlu1 %v1014_v19, %s937_s0 }
 0x234   :  { %510 = vrot.lane.b32.xlu1 %v1009_v16, %s937_s0 }
 0x238   :  { %508 = vrot.lane.b32.xlu1 %v1011_v17, %s937_s0 }
 0x239   :  { %512 = vrot.lane.b32.xlu0 %v1019_v20, %s937_s0 }
 0x23c   :  { %621 = vrot.lane.b32.xlu1 %v1049_v29, %s937_s0 }
 0x23d   :  { %623 = vrot.lane.b32.xlu0 %v1039_v27, %s937_s0 }
 0x29a   :  { %v425_v6 = vpop.xlane.xlu1 %424 }
 0x29b   :  { %v445_v7 = vsub.f32 %v412_v46, %v425_v6 }
 0x29c   :  { %v422_v8 = vpop.xlane.xlu0 %421 }
 0x29d   :  { %v454_v9 = vmul.f32 1.442695, %v445_v7  ;;  %v444_v10 = vsub.f32 %v411_v50, %v422_v8 }
 0x29f   :  { %904 = vpow2.f32 %v454_v9  ;;  %v452_v11 = vmul.f32 1.442695, %v444_v10 }
 0x2a0   :  { %v428_v12 = vpop.xlane.xlu0 %427 }
 0x2a1   :  { %906 = vpow2.f32 %v452_v11  ;;  %v446_v13 = vsub.f32 %v413_v54, %v428_v12 }
 0x2a3   :  { %v456_v14 = vmul.f32 1.442695, %v446_v13 }
 0x2a4   :  { %v434_v15 = vpop.xlane.xlu1 %433  ;;  %v431_v16 = vpop.xlane.xlu0 %430 }
 0x2a5   :  { %908 = vpow2.f32 %v456_v14  ;;  %v448_v17 = vsub.f32 %v415_v59, %v434_v15  ;;  %v447_v18 = vsub.f32 %v414_v57, %v431_v16 }
 0x2a7   :  { %v460_v19 = vmul.f32 1.442695, %v448_v17  ;;  %v458_v20 = vmul.f32 1.442695, %v447_v18 }
 0x2a8   :  { %v440_v21 = vpop.xlane.xlu1 %439  ;;  %v437_v22 = vpop.xlane.xlu0 %436 }
 0x2a9   :  { %910 = vpow2.f32 %v460_v19  ;;  %v450_v25 = vsub.f32 %v417_v1, %v440_v21  ;;  %v449_v26 = vsub.f32 %v416_v63, %v437_v22 }
 0x2aa   :  { %912 = vpow2.f32 %v458_v20 }
 0x2ab   :  { %v464_v27 = vmul.f32 1.442695, %v450_v25  ;;  %v462_v28 = vmul.f32 1.442695, %v449_v26 }
 0x2ac   :  { %v1109_v29 = vpop.eup %904  ;;  %v515_v30 = vpop.permute.xlu1 %514 }
 0x2ad   :  { %v443_v31 = vpop.xlane.xlu0 %442  ;;  %914 = vpow2.f32 %v464_v27  ;;  %874 = vmatprep.subr.mxu1 %v515_v30  ;;  %v471_v33 = vsel %vm419_vm3, %v1109_v29, 0.0 }
 0x2ae   :  { %v451_v32 = vsub.f32 %v418_v4, %v443_v31  ;;  %v907_v34 = vpop.eup %906  ;;  %916 = vpow2.f32 %v462_v28  ;;  %472 = vadd.xlane.f32.xlu0 %v471_v33  ;;  %875 = vmatpush3.msra.mxu1 %v515_v30 }
 0x2af   :  { %v468_v36 = vsel %vm419_vm3, %v907_v34, 0.0 }
 0x2b0   :  { %v466_v35 = vmul.f32 1.442695, %v451_v32  ;;  %v511_v37 = vpop.permute.xlu1 %510  ;;  %469 = vadd.xlane.f32.xlu1 %v468_v36 }
 0x2b1   :  { %v513_v38 = vpop.permute.xlu0 %512 }
 0x2b2   :  { %918 = vpow2.f32 %v466_v35  ;;  %876 = vmatprep.subr.mxu1 %v513_v38  ;;  %v909_v39 = vpop.eup %908 }
 0x2b3   :  { %877 = vmatpush3.msra.mxu1 %v513_v38  ;;  %v474_v40 = vsel %vm419_vm3, %v909_v39, 0.0 }
 0x2b4   :  { %878 = vmatprep.subr.mxu1 %v511_v37  ;;  %v509_v41 = vpop.permute.xlu1 %508  ;;  %475 = vadd.xlane.f32.xlu1 %v474_v40 }
 0x2b5   :  { %879 = vmatpush3.msra.mxu1 %v511_v37  ;;  %v624_v43 = vpop.permute.xlu0 %623 }
 0x2b6   :  { %880 = vmatprep.subr.mxu1 %v509_v41  ;;  %v911_v42 = vpop.eup %910 }
 0x2b7   :  { %881 = vmatpush3.msra.mxu1 %v509_v41  ;;  %v913_v44 = vpop.eup %912  ;;  %v480_v45 = vsel %vm419_vm3, %v911_v42, 0.0 }
 0x2b8   :  { %888 = vmatprep.subr.mxu1 %v624_v43  ;;  %481 = vadd.xlane.f32.xlu1 %v480_v45  ;;  %v477_v46 = vsel %vm419_vm3, %v913_v44, 0.0  ;;  %v622_v53 = vpop.permute.xlu1 %621 }
 0x2b9   :  { %478 = vadd.xlane.f32.xlu0 %v477_v46 }
 0x2ba   :  { %v915_v47 = vpop.eup %914 }
 0x2bb   :  { %v917_v48 = vpop.eup %916  ;;  %v486_v49 = vsel %vm419_vm3, %v915_v47, 0.0 }
 0x2bc   :  { %487 = vadd.xlane.f32.xlu1 %v486_v49  ;;  %v483_v50 = vsel %vm419_vm3, %v917_v48, 0.0 }
 0x2bd   :  { %484 = vadd.xlane.f32.xlu0 %v483_v50 }
 0x2bf   :  { %v919_v51 = vpop.eup %918 }
 0x2c0   :  { %v489_v52 = vsel %vm419_vm3, %v919_v51, 0.0 }
 0x2c1   :  { %490 = vadd.xlane.f32.xlu0 %v489_v52 }
 0x2cd   :  { %617 = vrot.lane.b32.xlu1 %v1031_v24, %s937_s0 }
 0x2d7   :  { %619 = vrot.lane.b32.xlu0 %v1027_v23, %s937_s0 }
 0x337   :  { %v473_v54 = vpop.xlane.xlu0 %472 }
 0x338   :  { %920 = vrcp.f32 %v473_v54 }
 0x339   :  { %v470_v55 = vpop.xlane.xlu1 %469 }
 0x33a   :  { %922 = vrcp.f32 %v470_v55 }
 0x33d   :  { %v476_v56 = vpop.xlane.xlu1 %475 }
 0x33e   :  { %924 = vrcp.f32 %v476_v56 }
 0x341   :  { %v482_v57 = vpop.xlane.xlu1 %481 }
 0x342   :  { %926 = vrcp.f32 %v482_v57  ;;  %v479_v58 = vpop.xlane.xlu0 %478 }
 0x343   :  { %928 = vrcp.f32 %v479_v58 }
 0x345   :  { %v488_v59 = vpop.xlane.xlu1 %487  ;;  %v921_v60 = vpop.eup %920 }
 0x346   :  { %930 = vrcp.f32 %v488_v59  ;;  %v485_v61 = vpop.xlane.xlu0 %484  ;;  %v501_v23 = vmul.f32 %v921_v60, %v1109_v29 }
 0x347   :  { %v923_v62 = vpop.eup %922  ;;  %932 = vrcp.f32 %v485_v61 }
 0x348   :  { %v500_v24 = vmul.f32 %v923_v62, %v907_v34 }
 0x349   :  { %v618_v5 = vpop.permute.xlu1 %617 }
 0x34a   :  { %v491_v63 = vpop.xlane.xlu0 %490  ;;  %882 = vmatprep.mubr.msk.f32.mxu1 %vm419_vm3, %v500_v24 }
 0x34b   :  { %v925_v0 = vpop.eup %924  ;;  %934 = vrcp.f32 %v491_v63  ;;  %883 = vmatmul.mubr.msk.f32.vlgmr.msra.gmra.mxu1 %vm419_vm3, %v501_v23 }
 0x34c   :  { %889 = vmatpush3.msra.mxu1 %v624_v43  ;;  %v502_v1 = vmul.f32 %v925_v0, %v909_v39 }
 0x34d   :  { %890 = vmatprep.subr.mxu1 %v622_v53 }
 0x34e   :  { %891 = vmatpush3.msra.mxu1 %v622_v53  ;;  %v620_v2 = vpop.permute.xlu0 %619  ;;  %885 = vmatprep.mubr.msk.f32.mxu1 %vm419_vm3, %v502_v1 }
 0x34f   :  { %v927_v3 = vpop.eup %926  ;;  %892 = vmatprep.subr.mxu1 %v620_v2 }
 0x350   :  { %v929_v4 = vpop.eup %928  ;;  %893 = vmatpush3.msra.mxu1 %v620_v2  ;;  %v504_v6 = vmul.f32 %v927_v3, %v911_v42 }
 0x351   :  { %894 = vmatprep.subr.mxu1 %v618_v5  ;;  %v503_v7 = vmul.f32 %v929_v4, %v913_v44 }
 0x352   :  { %895 = vmatpush3.msra.mxu1 %v618_v5 }
 0x353   :  { %v931_v8 = vpop.eup %930  ;;  %886 = vmatmul.mubr.msk.f32.gmra.mxu1 %vm419_vm3, %v503_v7 }
 0x354   :  { %v933_v9 = vpop.eup %932  ;;  %896 = vmatprep.mubr.msk.f32.mxu1 %vm419_vm3, %v504_v6  ;;  %v506_v10 = vmul.f32 %v931_v8, %v915_v47 }
 0x355   :  { %v505_v11 = vmul.f32 %v933_v9, %v917_v48 }
 0x357   :  { %897 = vmatmul.mubr.msk.f32.vlgmr.msra.gmra.mxu1 %vm419_vm3, %v505_v11 }
 0x358   :  { %v935_v12 = vpop.eup %934  ;;  %899 = vmatprep.mubr.msk.f32.mxu1 %vm419_vm3, %v506_v10 }
 0x359   :  { %v507_v13 = vmul.f32 %v935_v12, %v919_v51 }
 0x35b   :  { %900 = vmatmul.mubr.msk.f32.gmra.mxu1 %vm419_vm3, %v507_v13 }
 0x40b   :  { %v884_v14 = vpop.f32.mrf.mxu1 }
 0x40c   :  { %727 = vst.msk [vmem:[%s1167_s2 + $0x8] sm:$0xff] %vm177_vm1, %v884_v14 }
 0x40d   :  { %v598_v15 = vpop.f32.mrf.mxu1 }
 0x40e   :  { %726 = vst.msk [vmem:[%s1167_s2] sm:$0xff] %vm177_vm1, %v598_v15 }
 0x413   :  { %v887_v16 = vpop.f32.mrf.mxu1 }
 0x414   :  { %729 = vst.msk [vmem:[%s1167_s2 + $0x18] sm:$0xff] %vm177_vm1, %v887_v16 }
 0x415   :  { %v608_v17 = vpop.f32.mrf.mxu1 }
 0x416   :  { %728 = vst.msk [vmem:[%s1167_s2 + $0x10] sm:$0xff] %vm177_vm1, %v608_v17 }
 0x417   :  { %v898_v18 = vpop.f32.mrf.mxu1 }
 0x418   :  { %731 = vst.msk [vmem:[%s1167_s2 + $0x28] sm:$0xff] %vm177_vm1, %v898_v18 }
 0x419   :  { %v707_v19 = vpop.f32.mrf.mxu1 }
 0x41a   :  { %730 = vst.msk [vmem:[%s1167_s2 + $0x20] sm:$0xff] %vm177_vm1, %v707_v19 }
 0x41b   :  { %v901_v20 = vpop.f32.mrf.mxu1 }
 0x41c   :  { %733 = vst.msk [vmem:[%s1167_s2 + $0x38] sm:$0xff] %vm177_vm1, %v901_v20 }
 0x41d   :  { %v717_v21 = vpop.f32.mrf.mxu1 }
 0x41e   :  { %732 = vst.msk [vmem:[%s1167_s2 + $0x30] sm:$0xff] %vm177_vm1, %v717_v21 }

</bundles_post_ra>
